<compile_context>
chip_gen: v7x
topology: tpu7x:2x2x1
jax: 0.10.0
libtpu: 0.0.40
codegen_flags: <defaults>
</compile_context>

<pallas_src>
import functools

import jax
import jax.numpy as jnp
from jax.experimental import pallas as pl
from jax.experimental.pallas import tpu as pltpu


def _round_up(v, m):
    return ((v + m - 1) // m) * m


@functools.lru_cache(maxsize=1)
def _num_tensorcores():
    # v5e / v6e expose 1 TensorCore per chip; v4 / v5p / v7x expose 2.
    try:
        kind = jax.devices()[0].device_kind.lower()
    except Exception:  # pragma: no cover - defensive only
        return 1
    if "v5 lite" in kind or "v5e" in kind or "v6" in kind:
        return 1
    return 2


# ----------------------------- kernels --------------------------------------
def _affine_kernel(x_ref, w_ref, b_ref, o_ref):
    # Folded MLP:  y = x @ (w1 @ w2) + (b1 @ w2 + b2).
    x = x_ref[...].astype(w_ref.dtype)                   # in-kernel bf16 cast
    y = jnp.dot(x, w_ref[...], preferred_element_type=jnp.float32)
    o_ref[...] = (y + b_ref[...]).astype(o_ref.dtype)    # f32 bias add, lane-dense store


def _mlp2_kernel(x_ref, w1_ref, b1_ref, w2_ref, b2_ref, o_ref):
    # Un-folded path: two MXU matmuls with f32 accumulation.
    x = x_ref[...].astype(w1_ref.dtype)
    h = jnp.dot(x, w1_ref[...], preferred_element_type=jnp.float32) + b1_ref[...]
    y = jnp.dot(h.astype(w2_ref.dtype), w2_ref[...],
                preferred_element_type=jnp.float32)
    o_ref[...] = (y + b2_ref[...]).astype(o_ref.dtype)


# ------------------------ one-time parameter prep ---------------------------
def prepare_mlp_params(w1, b1, w2, b2, *, fold_layers=True,
                       param_dtype=jnp.bfloat16):
    """One-time weight preparation (do NOT call per forward pass).

    Weights are stored [in, out] (transposed w.r.t. torch nn.Linear.weight),
    the output feature dim is zero-padded to a multiple of 128 lanes, matmul
    operands are cast to bf16 once, and (optionally) the two bias-only linears
    are folded into a single affine map (exact re-association: no nonlinearity
    exists between l1 and l2 in the module).
    Returns (params, out_features).
    """
    out_features = w2.shape[1]
    out_p = _round_up(out_features, 128)
    pad_n = out_p - out_features
    w2p = jnp.pad(w2, ((0, 0), (0, pad_n))) if pad_n else w2
    b2p = jnp.pad(b2, ((0, pad_n),)) if pad_n else b2

    if fold_layers:
        w = w1.astype(jnp.float32) @ w2p.astype(jnp.float32)          # f32 fold
        b = b1.astype(jnp.float32) @ w2p.astype(jnp.float32) + b2p.astype(jnp.float32)
        params = (w.astype(param_dtype),                               # [in, out_p] bf16
                  b.reshape(1, out_p).astype(jnp.float32))             # [1,  out_p] f32
    else:
        hidden = w1.shape[1]
        params = (w1.astype(param_dtype),                              # [in, hidden]
                  b1.reshape(1, hidden).astype(jnp.float32),
                  w2p.astype(param_dtype),                             # [hidden, out_p]
                  b2p.reshape(1, out_p).astype(jnp.float32))
    return params, out_features


# ------------------------------ forward --------------------------------------
@functools.partial(jax.jit, static_argnums=(2, 3))
def _mlp_forward_impl(x, params, out_dtype, tb):
    B, in_features = x.shape
    folded = len(params) == 2
    out_p = params[-1].shape[-1]

    B_p = _round_up(B, tb)
    x_p = x if B_p == B else jnp.pad(x, ((0, B_p - B), (0, 0)))
    grid = (B_p // tb,)

    # Weights/biases use grid-invariant BlockSpecs -> single-buffered, VMEM
    # resident across the whole grid (no re-DMA per batch tile).
    # TODO(synk): v7x scale-up guard — once the resident bf16 weight footprint
    # approaches ~20 MiB (vs. 64 MiB physical VMEM), switch to a K grid axis
    # marked "arbitrary" with an f32 VMEM accumulator (pl.when init/finalize).
    if folded:
        w, b = params
        kernel = _affine_kernel
        in_specs = [
            pl.BlockSpec((tb, in_features), lambda i: (i, 0)),        # x (f32)
            pl.BlockSpec((in_features, out_p), lambda i: (0, 0)),     # W (bf16)
            pl.BlockSpec((1, out_p), lambda i: (0, 0)),               # b (f32)
        ]
        args = (x_p, w, b)
        flops = 2 * B_p * in_features * out_p
        bytes_accessed = (x_p.size * x_p.dtype.itemsize
                          + w.size * w.dtype.itemsize + b.size * 4
                          + B_p * out_p * jnp.dtype(out_dtype).itemsize)
    else:
        w1, b1, w2, b2 = params
        hidden = w1.shape[1]
        kernel = _mlp2_kernel
        in_specs = [
            pl.BlockSpec((tb, in_features), lambda i: (i, 0)),
            pl.BlockSpec((in_features, hidden), lambda i: (0, 0)),
            pl.BlockSpec((1, hidden), lambda i: (0, 0)),
            pl.BlockSpec((hidden, out_p), lambda i: (0, 0)),
            pl.BlockSpec((1, out_p), lambda i: (0, 0)),
        ]
        args = (x_p, w1, b1, w2, b2)
        flops = 2 * B_p * (in_features * hidden + hidden * out_p)
        bytes_accessed = (x_p.size * x_p.dtype.itemsize
                          + w1.size * 2 + b1.size * 4 + w2.size * 2 + b2.size * 4
                          + B_p * out_p * jnp.dtype(out_dtype).itemsize)

    return pl.pallas_call(
        kernel,
        out_shape=jax.ShapeDtypeStruct((B_p, out_p), out_dtype),
        grid_spec=pltpu.PrefetchScalarGridSpec(
            num_scalar_prefetch=0,
            grid=grid,
            in_specs=in_specs,
            out_specs=pl.BlockSpec((tb, out_p), lambda i: (i, 0)),
        ),
        compiler_params=pltpu.CompilerParams(
            # batch tiles are independent -> shard across TensorCores on v7x
            dimension_semantics=("parallel",)),
        cost_estimate=pl.CostEstimate(flops=flops, transcendentals=0,
                                      bytes_accessed=bytes_accessed),
    )(*args)


def mlp_forward(x, params, *, out_dtype=jnp.bfloat16, block_b=None):
    """MLP forward.  Returns the lane-padded (B_p, out_p) slab; the logical
    result is `out[:B, :out_features]` (consumers should fold that slice in
    rather than materializing an eager copy)."""
    if block_b is None:
        B = x.shape[0]
        n_tc = _num_tensorcores()
        # One batch tile per TensorCore; 16-row multiple (bf16-native sublane
        # packing). Single-TC v5e/v6e => one grid step; dual-TC v7x => two.
        block_b = _round_up(max(pl.cdiv(B, n_tc), 16), 16)
    return _mlp_forward_impl(x, params, out_dtype, int(block_b))


# ------------------------------- test ----------------------------------------
if __name__ == "__main__":
    in_features, hidden_dimension, out_features = 64, 128, 64
    batch = 256  # fills the MXU M dimension on a single-TC block

    key = jax.random.PRNGKey(0)
    kx, kw1, kb1, kw2, kb2 = jax.random.split(key, 5)

    # Deterministic nn.Linear-like init; weights stored [in, out].
    bound1 = 1.0 / (in_features ** 0.5)
    bound2 = 1.0 / (hidden_dimension ** 0.5)
    w1 = jax.random.uniform(kw1, (in_features, hidden_dimension),
                            jnp.float32, -bound1, bound1)
    b1 = jax.random.uniform(kb1, (hidden_dimension,), jnp.float32, -bound1, bound1)
    w2 = jax.random.uniform(kw2, (hidden_dimension, out_features),
                            jnp.float32, -bound2, bound2)
    b2 = jax.random.uniform(kb2, (out_features,), jnp.float32, -bound2, bound2)
    x = jax.random.normal(kx, (batch, in_features), jnp.float32)

    # Pure-JAX f32 reference (the PyTorch MLP has no activation between layers).
    ref = (x @ w1 + b1) @ w2 + b2

    # --- default path: folded single-matmul kernel ---------------------------
    params_folded, out_f = prepare_mlp_params(w1, b1, w2, b2, fold_layers=True)
    out_pad = jax.block_until_ready(mlp_forward(x, params_folded))
    out = jnp.asarray(out_pad[:batch, :out_f], jnp.float32)  # consumer-side strip
    assert out.shape == (batch, out_features)
    err = float(jnp.max(jnp.abs(out - ref)))
    assert jnp.allclose(out, ref, atol=5e-2, rtol=5e-2), err

    # --- un-folded two-matmul kernel (kept for strict layer-by-layer use) ----
    params_two, _ = prepare_mlp_params(w1, b1, w2, b2, fold_layers=False)
    out2_pad = jax.block_until_ready(mlp_forward(x, params_two))
    out2 = jnp.asarray(out2_pad[:batch, :out_f], jnp.float32)
    err2 = float(jnp.max(jnp.abs(out2 - ref)))
    assert jnp.allclose(out2, ref, atol=5e-2, rtol=5e-2), err2

    print("KERNEL_OK")
</pallas_src>

<mosaic_0001>
module attributes {stable_mosaic.version = 11 : i64} {
  func.func @_affine_kernel(%arg0: i32, %arg1: memref<128x64xf32, #tpu.memory_space<vmem>>, %arg2: memref<64x128xbf16, #tpu.memory_space<vmem>>, %arg3: memref<1x128xf32, #tpu.memory_space<vmem>>, %arg4: memref<128x128xbf16, #tpu.memory_space<vmem>>) attributes {dimension_semantics = [#tpu.dimension_semantics<parallel>], iteration_bounds = array<i64: 2>, scalar_prefetch = 0 : i64, scratch_operands = 0 : i64, tpu.core_type = #tpu.core_type<tc>, window_params = [{transform_indices = @transform_0, window_bounds = array<i64: 128, 64>}, {pipeline_mode = #tpu.pipeline_mode<synchronous>, transform_indices = @transform_1, window_bounds = array<i64: 64, 128>}, {pipeline_mode = #tpu.pipeline_mode<synchronous>, transform_indices = @transform_2, window_bounds = array<i64: 1, 128>}, {transform_indices = @transform_3, window_bounds = array<i64: 128, 128>}]} {
    %c0 = arith.constant 0 : index
    %c0_0 = arith.constant 0 : index
    %0 = vector.load %arg1[%c0, %c0_0] : memref<128x64xf32, #tpu.memory_space<vmem>>, vector<128x64xf32>
    %1 = arith.truncf %0 : vector<128x64xf32> to vector<128x64xbf16>
    %c0_1 = arith.constant 0 : index
    %c0_2 = arith.constant 0 : index
    %2 = vector.load %arg2[%c0_1, %c0_2] : memref<64x128xbf16, #tpu.memory_space<vmem>>, vector<64x128xbf16>
    %cst = arith.constant dense<0.000000e+00> : vector<128x128xf32>
    %3 = tpu.matmul %1, %2, %cst {dimension_numbers = #tpu.dot_dimension_numbers<[1], [0], [0], [1], [0, 0, 1, 1], [], []>} : vector<128x64xbf16>, vector<64x128xbf16>, vector<128x128xf32> -> vector<128x128xf32>
    %c0_3 = arith.constant 0 : index
    %c0_4 = arith.constant 0 : index
    %4 = vector.load %arg3[%c0_3, %c0_4] : memref<1x128xf32, #tpu.memory_space<vmem>>, vector<1x128xf32>
    %5 = vector.broadcast %4 : vector<1x128xf32> to vector<128x128xf32>
    %6 = arith.addf %3, %5 : vector<128x128xf32>
    %7 = arith.truncf %6 : vector<128x128xf32> to vector<128x128xbf16>
    %c0_5 = arith.constant 0 : index
    %c0_6 = arith.constant 0 : index
    %8 = vector.load %arg4[%c0_5, %c0_6] : memref<128x128xbf16, #tpu.memory_space<vmem>>, vector<128x128xbf16>
    tpu.vector_store %arg4[%c0_5, %c0_6], %7 {strides = array<i32>} : memref<128x128xbf16, #tpu.memory_space<vmem>>, vector<128x128xbf16>,
    return
  }
  func.func @transform_0(%arg0: i32) -> (i32, i32) {
    %c0_i32 = arith.constant 0 : i32
    %c0_i32_0 = arith.constant 0 : i32
    return %arg0, %c0_i32 : i32, i32
  }
  func.func @transform_1(%arg0: i32) -> (i32, i32) {
    %c0_i32 = arith.constant 0 : i32
    %c0_i32_0 = arith.constant 0 : i32
    %c0_i32_1 = arith.constant 0 : i32
    return %c0_i32, %c0_i32_0 : i32, i32
  }
  func.func @transform_2(%arg0: i32) -> (i32, i32) {
    %c0_i32 = arith.constant 0 : i32
    %c0_i32_0 = arith.constant 0 : i32
    %c0_i32_1 = arith.constant 0 : i32
    return %c0_i32, %c0_i32_0 : i32, i32
  }
  func.func @transform_3(%arg0: i32) -> (i32, i32) {
    %c0_i32 = arith.constant 0 : i32
    %c0_i32_0 = arith.constant 0 : i32
    return %arg0, %c0_i32 : i32, i32
  }
}

</mosaic_0001>

<bundles_post_ra>
// kernel: _mlp_forward_impl.1
= control target key start
LH: loop header
LB: loop body
LE: loop exit
PB: predicated region body
PF: predicated region fallthrough
CT: control target
= control target key end

     0   :  { %8 = vsyncpa [#allocation3], 0  ;;  %s953_s0 = inlined_call_operand.vmem [shape: f32[256,64], index: 0, kind: input, shape index: {}]   ;;  %s954_s1 = inlined_call_operand.vmem [shape: bf16[64,128], index: 1, kind: input, shape index: {}]   ;;  %s955_s2 = inlined_call_operand.vmem [shape: f32[1,128], index: 2, kind: input, shape index: {}]   ;;  %s956_s3 = inlined_call_operand.hbm [shape: bf16[256,128], index: 3, kind: output, shape index: {}]  }
   0x1   :  { %10 = vsyncpa [#allocation3 + $0x1], 0  ;;  %s795_s12 = smov 0   ;;  %s797_s13 = smov 0  }
   0x2   :  { %s799_s14 = smov 0   ;;  %s801_s15 = smov 0  }
   0x3 LB: > { %s816_s16 = sadd.s32 4294967295, %s770_s15   ;;  %s514_s17 = sadd.s32 4294967294, %s770_s15   ;;  %s770_s15 = sphi %s801_s15, %s962_s15   ;;  %s766_s14 = sphi %s799_s14, %s961_s14   ;;  %s762_s13 = sphi %s797_s13, %s960_s13   ;;  %s758_s12 = sphi %s795_s12, %s959_s12  }
   0x4   : > { %s820_s18 = sadd.s32 1, %s770_s15   ;;  %s91_s19 = sadd.s32 1, %s766_s14 }
   0x5   : > { %s88_s20 = ssub.s32 %s770_s15, %s820_s18  ;;  %p101_p0 = scmp.ne.s32.totalorder %s766_s14, %s762_s13 }
   0x6   : > { %p89_p1 = scmp.eq.s32.totalorder %s88_s20, 0  ;;  %p102_p2 = scmp.eq.s32.totalorder %s816_s16, 1 }
   0x7   : > { %p107_p3 = scmp.ne.s32.totalorder %s762_s13, %s758_s12  ;;  %p108_p4 = scmp.eq.s32.totalorder %s514_s17, 1 }
   0x8   : > { %s831_s21 = scalar_select %p89_p1, %s766_s14, %s91_s19  }
   0x9   : > { %p833_p5 = por %p102_p2, %p101_p0  ;;  %p837_p6 = por %p108_p4, %p107_p3 }
   0xa   : > { %p517_p7 = scmp.ge.s32.totalorder %s770_s15, 1  ;;  %p141_p8 = scmp.lt.s32.totalorder %s770_s15, 3 }
   0xc   : > { %p142_p9 = pnand %p517_p7, %p141_p8 }
   0xd   : > { %v704_v0 = vld [vmem:[%s954_s1] sm:$0xff] (!%p142_p9)   ;;  %s519_s26 = sshll.u32 (!%p142_p9), %s816_s16, 4  ;;  %v705_v1 = vld [vmem:[%s954_s1 + $0x8] sm:$0xff] (!%p142_p9)   ;;  %v706_v2 = vld [vmem:[%s954_s1 + $0x10] sm:$0xff] (!%p142_p9)   ;;  %vm236_vm0 = vcmask (!%p142_p9), 523264   ;;  %s162_s10 = sand.u32 (!%p142_p9), 1, %s762_s13  }
   0xe   : > { %145 = sbr.rel (%p142_p9) target bundleno = 273 (0x111), region = 32  ;;  %p166_p10 = scmp.lt.s32.totalorder (!%p142_p9), %s519_s26, 31  ;;  %631 = vmatprep.subr.bf16.mxu0 (!%p142_p9), %v704_v0  ;;  %655 = vmatprep.subr.bf16.mxu1 (!%p142_p9), %v704_v0  ;;  %v707_v6 = vld [vmem:[%s954_s1 + $0x18] sm:$0xff] (!%p142_p9)   ;;  %v521_v29 = vld [vmem:[%s955_s2] ss:$0 sm:$0xff] (!%p142_p9) }
   0xf   : > { %632 = vmatpush3.bf16.msra.mxu0 (!%p142_p9), %v704_v0  ;;  %659 = vmatpush3.bf16.msra.mxu1 (!%p142_p9), %v704_v0  ;;  %s518_s19 = sshll.u32 (!%p142_p9), %s162_s10, 6  ;;  %s571_s24 = sshll.u32 (!%p142_p9), %s816_s16, 10 }
  0x10   : > { %633 = vmatprep.subr.bf16.mxu0 (!%p142_p9), %v705_v1  ;;  %656 = vmatprep.subr.bf16.mxu1 (!%p142_p9), %v705_v1  ;;  %s891_s20 = scalar_lea.vmem (!%p142_p9), [#allocation2], %s518_s19  ;;  %s902_s27 = scalar_lea.hbm (!%p142_p9), %s956_s3, %s571_s24 }
  0x11   : > { %s452_s25 = sshll.u32 (!%p142_p9), %s891_s20, 4  ;;  %s912_s28 = scalar_lea.sflag (!%p142_p9), [#allocation3], %s162_s10  ;;  %s904_s25 = int_to_ptr.vmem [resolvable:$true] %s452_s25 }
  0x12   : > { %s708_s29 = scalar_lea.vmem (!%p142_p9), %s904_s25, 1024  ;;  %s772_s30 = smov (!%p142_p9), [#allocation2]  }
  0x13   : > { %634 = vmatpush3.bf16.msra.mxu0 (!%p142_p9), %v705_v1  ;;  %660 = vmatpush3.bf16.msra.mxu1 (!%p142_p9), %v705_v1  ;;  %p709_p11 = scmp.ne.s32.totalorder (!%p142_p9), %s904_s25, %s708_s29 }
  0x14   : > { %635 = vmatprep.subr.bf16.mxu0 (!%p142_p9), %v706_v2  ;;  %657 = vmatprep.subr.bf16.mxu1 (!%p142_p9), %v706_v2 }
  0x15   : > { %s964_s26 = smov (!%p166_p10, %s519_s26), 31  ;;  %p710_p12 = pnand %p709_p11, %p833_p5 }
  0x16   : > { %s520_s4 = sshll.u32 %s964_s26, 3 }
  0x17   : > { %s856_s7 = scalar_lea.vmem %s953_s0, %s520_s4  ;;  %636 = vmatpush3.bf16.msra.mxu0 %v706_v2  ;;  %661 = vmatpush3.bf16.msra.mxu1 %v706_v2  ;;  %p711_p13 = pneg %p710_p12 }
  0x18   : > { %v173_v3 = vld [vmem:[%s856_s7] sm:$0xff]  ;;  %v174_v4 = vld [vmem:[%s856_s7 + $0x8] sm:$0xff]  ;;  %v175_v10 = vld [vmem:[%s856_s7 + $0x10] sm:$0xff]  ;;  %637 = vmatprep.subr.bf16.mxu0 %v707_v6  ;;  %658 = vmatprep.subr.bf16.mxu1 %v707_v6  ;;  %s712_s4 = sshll.u32 %s772_s30, 4  ;;  %s713_s4 = int_to_ptr.vmem [resolvable:$false] %s712_s4 }
  0x19   : > { %v181_v5 = vld [vmem:[%s856_s7 + $0x40] sm:$0xff]  ;;  %v189_v7 = vpack.c.bf16 %v174_v4, %v173_v3  ;;  %v182_v8 = vld [vmem:[%s856_s7 + $0x48] sm:$0xff]  ;;  %v176_v11 = vld [vmem:[%s856_s7 + $0x18] sm:$0xff]  ;;  %s714_s5 = scalar_lea.vmem %s713_s4, 2048  ;;  %p715_p0 = scmp.lt.s32.totalorder %s904_s25, %s713_s4 }
  0x1a   : > { %v193_v9 = vpack.c.bf16 %v182_v8, %v181_v5  ;;  %v183_v12 = vld [vmem:[%s856_s7 + $0x50] sm:$0xff]  ;;  %v184_v13 = vld [vmem:[%s856_s7 + $0x58] sm:$0xff]  ;;  %v177_v14 = vld [vmem:[%s856_s7 + $0x20] sm:$0xff]  ;;  %v190_v18 = vpack.c.bf16 %v176_v11, %v175_v10  ;;  %p716_p1 = scmp.lt.s32.totalorder %s714_s5, %s708_s29 }
  0x1b   : > { %639 = vmatprep.mubr.msk.bf16.mxu0 %vm236_vm0, %v189_v7  ;;  %v178_v15 = vld [vmem:[%s856_s7 + $0x28] sm:$0xff]  ;;  %v185_v16 = vld [vmem:[%s856_s7 + $0x60] sm:$0xff]  ;;  %v194_v19 = vpack.c.bf16 %v184_v13, %v183_v12  ;;  %638 = vmatpush3.bf16.msra.mxu0 %v707_v6  ;;  %v179_v22 = vld [vmem:[%s856_s7 + $0x30] sm:$0xff] }
  0x1c   : > { %v186_v17 = vld [vmem:[%s856_s7 + $0x68] sm:$0xff]  ;;  %647 = vmatprep.mubr.msk.bf16.mxu1 %vm236_vm0, %v193_v9  ;;  %662 = vmatpush3.bf16.msra.mxu1 %v707_v6  ;;  %v191_v20 = vpack.c.bf16 %v178_v15, %v177_v14  ;;  %v180_v23 = vld [vmem:[%s856_s7 + $0x38] sm:$0xff]  ;;  %v187_v24 = vld [vmem:[%s856_s7 + $0x70] sm:$0xff]  ;;  %p717_p2 = por %p716_p1, %p715_p0 }
  0x1d   : > { %v195_v21 = vpack.c.bf16 %v186_v17, %v185_v16  ;;  %v188_v25 = vld [vmem:[%s856_s7 + $0x78] sm:$0xff]  ;;  %v192_v26 = vpack.c.bf16 %v180_v23, %v179_v22 }
  0x1e   : > { %640 = vmatmul.mubr.msk.bf16.vlgmr.msra.gmra.mrb[0].mxu0 %vm236_vm0, %v190_v18  ;;  %v196_v27 = vpack.c.bf16 %v188_v25, %v187_v24  ;;  %p718_p3 = pnand %p717_p2, %p711_p13 }
  0x1f   : > { %648 = vmatmul.mubr.msk.bf16.vlgmr.msra.gmra.mrb[0].mxu1 %vm236_vm0, %v194_v19  ;;  %643 = vmatprep.mubr.msk.bf16.mxu0 %vm236_vm0, %v191_v20 }
  0x20   : > { %651 = vmatprep.mubr.msk.bf16.mxu1 %vm236_vm0, %v195_v21 }
  0x26   : > { %644 = vmatmul.mubr.msk.bf16.gmra.mrb[4].mxu0 %vm236_vm0, %v192_v26 }
  0x27   : > { %652 = vmatmul.mubr.msk.bf16.gmra.mrb[4].mxu1 %vm236_vm0, %v196_v27 }
  0xf1   : > { %v641_v28 = vpop.f32.mrb[0].mxu0 }
  0xf2   : > { %v649_v30 = vpop.f32.mrb[0].mxu1  ;;  %v295_v31 = vpop.f32.mrb[1].mxu0  ;;  %v304_v35 = vadd.f32 %v641_v28, %v521_v29 }
  0xf3   : > { %v327_v32 = vpop.f32.mrb[1].mxu1  ;;  %v642_v33 = vpop.f32.mrb[2].mxu0  ;;  %v336_v36 = vadd.f32 %v649_v30, %v521_v29  ;;  %v296_v41 = vadd.f32 %v521_v29, %v295_v31 }
  0xf4   : > { %v650_v34 = vpop.f32.mrb[2].mxu1  ;;  %v307_v37 = vadd.f32 %v642_v33, %v521_v29  ;;  %v298_v39 = vpop.f32.mrb[3].mxu0  ;;  %v328_v42 = vadd.f32 %v521_v29, %v327_v32 }
  0xf5   : > { %v339_v38 = vadd.f32 %v650_v34, %v521_v29  ;;  %v330_v40 = vpop.f32.mrb[3].mxu1  ;;  %v299_v43 = vadd.f32 %v521_v29, %v298_v39 }
  0xf6   : > { %v331_v44 = vadd.f32 %v521_v29, %v330_v40  ;;  %v580_v45 = vpack.c.bf16 %v307_v37, %v304_v35 }
  0xf7   : > { %v600_v46 = vpack.c.bf16 %v339_v38, %v336_v36  ;;  %v575_v47 = vpack.c.bf16 %v299_v43, %v296_v41 }
  0xf8   : > { %v595_v48 = vpack.c.bf16 %v331_v44, %v328_v42  ;;  %612 = vst [vmem:[%s891_s20 + $0x8] sm:$0xff] %v580_v45  }
  0xf9   : > { %616 = vst [vmem:[%s891_s20 + $0x28] sm:$0xff] %v600_v46   ;;  %576 = vst [vmem:[%s891_s20] sm:$0xff] %v575_v47   ;;  %v645_v49 = vpop.f32.mrb[4].mxu0 }
  0xfa   : > { %615 = vst [vmem:[%s891_s20 + $0x20] sm:$0xff] %v595_v48   ;;  %v653_v50 = vpop.f32.mrb[4].mxu1  ;;  %v311_v51 = vpop.f32.mrb[5].mxu0  ;;  %v320_v55 = vadd.f32 %v645_v49, %v521_v29 }
  0xfb   : > { %v343_v52 = vpop.f32.mrb[5].mxu1  ;;  %v646_v53 = vpop.f32.mrb[6].mxu0  ;;  %v352_v56 = vadd.f32 %v653_v50, %v521_v29  ;;  %v312_v61 = vadd.f32 %v521_v29, %v311_v51 }
  0xfc   : > { %v654_v54 = vpop.f32.mrb[6].mxu1  ;;  %v323_v57 = vadd.f32 %v646_v53, %v521_v29  ;;  %v314_v59 = vpop.f32.mrb[7].mxu0  ;;  %v344_v62 = vadd.f32 %v521_v29, %v343_v52 }
  0xfd   : > { %v355_v58 = vadd.f32 %v654_v54, %v521_v29  ;;  %v346_v60 = vpop.f32.mrb[7].mxu1  ;;  %v315_v63 = vadd.f32 %v521_v29, %v314_v59 }
  0xfe   : > { %v347_v0 = vadd.f32 %v521_v29, %v346_v60  ;;  %v590_v1 = vpack.c.bf16 %v323_v57, %v320_v55 }
  0xff   : > { %v610_v2 = vpack.c.bf16 %v355_v58, %v352_v56  ;;  %v585_v3 = vpack.c.bf16 %v315_v63, %v312_v61 }
 0x100   : > { %v605_v4 = vpack.c.bf16 %v347_v0, %v344_v62  ;;  %614 = vst [vmem:[%s891_s20 + $0x18] sm:$0xff] %v590_v1  }
 0x101   : > { %618 = vst [vmem:[%s891_s20 + $0x38] sm:$0xff] %v610_v2   ;;  %613 = vst [vmem:[%s891_s20 + $0x10] sm:$0xff] %v585_v3  }
 0x102   : > { %617 = vst [vmem:[%s891_s20 + $0x30] sm:$0xff] %v605_v4  }
 0x103   : > { %721 = shalt.err (!%p718_p3)
}
 0x104   : > { %s722_s6 = scalar_lea.hbm %s902_s27, 1024  ;;  %s726_s9 = scalar_lea.hbm %s956_s3, 2048 }
 0x105   : > { %p723_p4 = scmp.ne.s32.totalorder %s902_s27, %s722_s6  ;;  %p727_p9 = scmp.lt.u32.totalorder %s902_s27, %s956_s3 }
 0x106   : > { %p728_p10 = scmp.lt.u32.totalorder %s726_s9, %s722_s6  ;;  %p730_p12 = scmp.lt.u32.totalorder %s722_s6, %s902_s27 }
 0x107   : > { %p724_p7 = pnand %p723_p4, %p833_p5 }
 0x108   : > { %p729_p11 = por %p728_p10, %p727_p9 }
 0x109   : > { %p725_p8 = pneg %p724_p7 }
 0x10a   : > { %p731_p13 = por %p730_p12, %p729_p11 }
 0x10c   : > { %p732_p0 = pnand %p731_p13, %p725_p8 }
 0x10e   : > { %735 = shalt.err (!%p732_p0)
}
 0x10f   : > { %s773_s17 = smov 64   ;;  %s774_s19 = smov 4  }
 0x110   : > { %663 = dma.vmem_to_hbm [thread:$0]  (%p833_p5), %s904_s25, 1024, %s902_s27, %s912_s28, %s773_s17, %s773_s17, %s774_s19  }
 0x111 PF: > { %p669_p1 = scmp.ge.s32.totalorder %s770_s15, 2  ;;  %s467_s20 = sand.u32 1, %s758_s12  }
 0x112   : > { %s468_s24 = scalar_lea.sflag [#allocation3], %s467_s20 }
 0x113   : > { %p666_p2 = pnand %p669_p1, %p837_p6 }
 0x115   : > { %753 = dma.done.wait (!%p666_p2), %s468_s24, 1024  }
 0x116   : > { %755 = vsyncadd (!%p666_p2), %s468_s24, 4294966272  ;;  %p13_p3 = scmp.ge.s32.totalorder %s820_s18, 4   ;;  %s959_s12 = smov %s762_s13 }
 0x117   : > { %s960_s13 = smov %s766_s14  ;;  %s961_s14 = smov %s831_s21 }
 0x118   : > { %s962_s15 = smov %s820_s18  ;;  %15 = sbr.rel (!%p13_p3) target bundleno = 3 (0x3), region = 67 }
 0x11f   :  { %473 = vsyncpa [#allocation3], 1 }
 0x120   :  { %475 = vsyncpa [#allocation3 + $0x1], 1 }

</bundles_post_ra>
